<compile_context>
chip_gen: v6e
topology: v6e:2x2x1
jax: 0.10.0
libtpu: 0.0.40
codegen_flags: <defaults>
</compile_context>

<pallas_src>
import jax
import jax.numpy as jnp
from jax.experimental import pallas as pl
from jax.experimental.pallas import tpu as pltpu


def _leaky_relu(x, slope=0.2):
    return jnp.where(x > 0, x, slope * x)


def _round_up(v, m):
    return ((v + m - 1) // m) * m


def _tensorcores_per_chip():
    """Best-effort query of TensorCores per chip; 1 if unknown (v5e/v6e behavior)."""
    try:
        info = pltpu.get_tpu_info()
        for attr in ("num_cores", "cores_per_chip", "num_tensorcores", "tensorcore_count"):
            v = getattr(info, attr, None)
            if v:
                return int(v)
    except Exception:
        pass
    try:
        v = getattr(jax.devices()[0], "num_cores", None)
        if v:
            return int(v)
    except Exception:
        pass
    return 1


def encoder2_kernel(x_ref,
                    w1_ref, b1_ref,
                    w2_ref, b2_ref,
                    w3_ref, b3_ref,
                    w4_ref, b4_ref,
                    w5_ref, b5_ref,
                    o_ref):
    # Whole 5-layer MLP fused for one batch tile; all operands resident in VMEM.
    # x / weights arrive as bf16 (halved HBM traffic); accumulation and all
    # element-wise math are f32.
    h = jnp.dot(x_ref[...], w1_ref[...], preferred_element_type=jnp.float32)
    h = _leaky_relu(h + b1_ref[...])

    h = jnp.dot(h, w2_ref[...], preferred_element_type=jnp.float32)
    h = _leaky_relu(h + b2_ref[...])

    h = jnp.dot(h, w3_ref[...], preferred_element_type=jnp.float32)
    h = _leaky_relu(h + b3_ref[...])

    h = jnp.dot(h, w4_ref[...], preferred_element_type=jnp.float32)
    h = _leaky_relu(h + b4_ref[...])

    h = jnp.dot(h, w5_ref[...], preferred_element_type=jnp.float32)
    # Unpadded d_out columns: a masked store is far cheaper than padding the
    # output to 128 lanes of f32 and re-slicing in the wrapper.
    o_ref[...] = (h + b5_ref[...]).astype(o_ref.dtype)


def encoder2_forward(x, params, *, batch_tile=2048):
    """x: [B, dy] float32. params: list of (W[in,out] f32, b[1,out] f32) pairs."""
    B, dy = x.shape
    d_out = params[-1][0].shape[1]
    out_dtype = x.dtype

    # ---- cast streaming operands (x, weights) to bf16; biases stay f32 ----
    x_bf16 = x.astype(jnp.bfloat16)
    flat_params = []
    for (w, b) in params:
        flat_params.extend([w.astype(jnp.bfloat16), b.astype(jnp.float32)])

    # ---- batch tiling ----
    batch_tile = min(batch_tile, B)
    batch_tile = max(8, _round_up(batch_tile, 8))
    n_tiles = pl.cdiv(B, batch_tile)

    # Megacore balancing: only on multi-TensorCore chips (v7x), make the number
    # of grid steps a multiple of the core count; on v5e/v6e never split a
    # single tile (it just doubles per-step overhead).
    cores = _tensorcores_per_chip()
    if cores > 1 and (n_tiles % cores) != 0 and B >= 8 * cores:
        target = _round_up(n_tiles, cores)
        batch_tile = max(8, _round_up(pl.cdiv(B, target), 8))
        n_tiles = pl.cdiv(B, batch_tile)

    # Block specs: batch is tiled; every weight/bias uses its full shape with a
    # constant index_map (fetched once, resident in VMEM across grid steps).
    def full_spec(shape):
        rank = len(shape)
        return pl.BlockSpec(shape, lambda i, _r=rank: (0,) * _r)

    in_specs = [pl.BlockSpec((batch_tile, dy), lambda i: (i, 0))]
    for p in flat_params:
        in_specs.append(full_spec(p.shape))

    out_spec = pl.BlockSpec((batch_tile, d_out), lambda i: (i, 0))

    # Accurate (small) cost estimate: real flops / bytes, no transcendentals.
    flops = 2 * B * sum(int(w.shape[0]) * int(w.shape[1]) for w, _ in params)
    param_bytes = sum(int(p.size) * p.dtype.itemsize for p in flat_params)
    bytes_accessed = B * dy * 2 + param_bytes + B * d_out * 4
    cost = pl.CostEstimate(flops=flops, transcendentals=0,
                           bytes_accessed=bytes_accessed)

    fn = pl.pallas_call(
        encoder2_kernel,
        out_shape=jax.ShapeDtypeStruct((B, d_out), out_dtype),
        grid_spec=pltpu.PrefetchScalarGridSpec(
            num_scalar_prefetch=0,
            grid=(n_tiles,),
            in_specs=in_specs,
            out_specs=out_spec,
        ),
        compiler_params=pltpu.CompilerParams(
            dimension_semantics=("parallel",)),
        cost_estimate=cost,
    )
    return fn(x_bf16, *flat_params)


def init_linear(key, fan_in, fan_out):
    """Deterministic init mimicking PyTorch nn.Linear defaults.

    Returns W with shape [in, out] (transposed vs. PyTorch's [out, in]) and
    bias with shape [1, out] for in-kernel broadcasting.
    """
    k_w, k_b = jax.random.split(key)
    bound = 1.0 / jnp.sqrt(float(fan_in))
    w = jax.random.uniform(k_w, (fan_in, fan_out), jnp.float32, -bound, bound)
    b = jax.random.uniform(k_b, (1, fan_out), jnp.float32, -bound, bound)
    return w, b


def reference_forward(x, params):
    # Pure-JAX reference: bf16-rounded inputs/weights, f32 math.  The kernel
    # does a true bf16xbf16 MXU matmul with f32 accumulation, so results differ
    # slightly; covered by the 1e-3 tolerance.
    h = x.astype(jnp.bfloat16).astype(jnp.float32)
    for i, (w, b) in enumerate(params):
        wf = w.astype(jnp.bfloat16).astype(jnp.float32)
        h = h @ wf + b
        if i < len(params) - 1:
            h = jnp.where(h > 0, h, 0.2 * h)
    return h


if __name__ == "__main__":
    # Small shapes consistent with the module: args = {'dy': 8, 'DIM_FEATURES_y': 10}
    dy = 8
    dim_features_y = 10
    batch = 32

    key = jax.random.PRNGKey(0)
    keys = jax.random.split(key, 6)

    # Layer widths: dy -> 25 -> 15 -> 15 -> 15 -> DIM_FEATURES_y
    widths = [dy, 25, 15, 15, 15, dim_features_y]
    params = [init_linear(keys[i], widths[i], widths[i + 1]) for i in range(5)]

    x = jax.random.normal(keys[5], (batch, dy), jnp.float32)

    out = encoder2_forward(x, params)
    out = jax.block_until_ready(out)

    ref = reference_forward(x, params)
    assert out.shape == (batch, dim_features_y)
    assert jnp.allclose(out, ref, atol=1e-3, rtol=1e-3), "mismatch vs reference"

    print("KERNEL_OK")
</pallas_src>

<mosaic_0001>
module attributes {stable_mosaic.version = 11 : i64} {
  func.func @encoder2_kernel(%arg0: i32, %arg1: memref<32x8xbf16, #tpu.memory_space<vmem>>, %arg2: memref<8x25xbf16, #tpu.memory_space<vmem>>, %arg3: memref<1x25xf32, #tpu.memory_space<vmem>>, %arg4: memref<25x15xbf16, #tpu.memory_space<vmem>>, %arg5: memref<1x15xf32, #tpu.memory_space<vmem>>, %arg6: memref<15x15xbf16, #tpu.memory_space<vmem>>, %arg7: memref<1x15xf32, #tpu.memory_space<vmem>>, %arg8: memref<15x15xbf16, #tpu.memory_space<vmem>>, %arg9: memref<1x15xf32, #tpu.memory_space<vmem>>, %arg10: memref<15x10xbf16, #tpu.memory_space<vmem>>, %arg11: memref<1x10xf32, #tpu.memory_space<vmem>>, %arg12: memref<32x10xf32, #tpu.memory_space<vmem>>) attributes {dimension_semantics = [#tpu.dimension_semantics<parallel>], iteration_bounds = array<i64: 1>, scalar_prefetch = 0 : i64, scratch_operands = 0 : i64, tpu.core_type = #tpu.core_type<tc>, window_params = [{transform_indices = @transform_0, window_bounds = array<i64: 32, 8>}, {pipeline_mode = #tpu.pipeline_mode<synchronous>, transform_indices = @transform_1, window_bounds = array<i64: 8, 25>}, {pipeline_mode = #tpu.pipeline_mode<synchronous>, transform_indices = @transform_2, window_bounds = array<i64: 1, 25>}, {pipeline_mode = #tpu.pipeline_mode<synchronous>, transform_indices = @transform_3, window_bounds = array<i64: 25, 15>}, {pipeline_mode = #tpu.pipeline_mode<synchronous>, transform_indices = @transform_4, window_bounds = array<i64: 1, 15>}, {pipeline_mode = #tpu.pipeline_mode<synchronous>, transform_indices = @transform_5, window_bounds = array<i64: 15, 15>}, {pipeline_mode = #tpu.pipeline_mode<synchronous>, transform_indices = @transform_6, window_bounds = array<i64: 1, 15>}, {pipeline_mode = #tpu.pipeline_mode<synchronous>, transform_indices = @transform_7, window_bounds = array<i64: 15, 15>}, {pipeline_mode = #tpu.pipeline_mode<synchronous>, transform_indices = @transform_8, window_bounds = array<i64: 1, 15>}, {pipeline_mode = #tpu.pipeline_mode<synchronous>, transform_indices = @transform_9, window_bounds = array<i64: 15, 10>}, {pipeline_mode = #tpu.pipeline_mode<synchronous>, transform_indices = @transform_10, window_bounds = array<i64: 1, 10>}, {transform_indices = @transform_11, window_bounds = array<i64: 32, 10>}]} {
    %c0 = arith.constant 0 : index
    %c0_0 = arith.constant 0 : index
    %0 = vector.load %arg1[%c0, %c0_0] : memref<32x8xbf16, #tpu.memory_space<vmem>>, vector<32x8xbf16>
    %c0_1 = arith.constant 0 : index
    %c0_2 = arith.constant 0 : index
    %1 = vector.load %arg2[%c0_1, %c0_2] : memref<8x25xbf16, #tpu.memory_space<vmem>>, vector<8x25xbf16>
    %cst = arith.constant dense<0.000000e+00> : vector<32x25xf32>
    %2 = tpu.matmul %0, %1, %cst {dimension_numbers = #tpu.dot_dimension_numbers<[1], [0], [0], [1], [0, 0, 1, 1], [], []>} : vector<32x8xbf16>, vector<8x25xbf16>, vector<32x25xf32> -> vector<32x25xf32>
    %c0_3 = arith.constant 0 : index
    %c0_4 = arith.constant 0 : index
    %3 = vector.load %arg3[%c0_3, %c0_4] : memref<1x25xf32, #tpu.memory_space<vmem>>, vector<1x25xf32>
    %4 = vector.broadcast %3 : vector<1x25xf32> to vector<32x25xf32>
    %5 = arith.addf %2, %4 : vector<32x25xf32>
    %cst_5 = arith.constant 0.000000e+00 : f32
    %6 = vector.broadcast %cst_5 : f32 to vector<32x25xf32>
    %7 = arith.cmpf ogt, %5, %6 : vector<32x25xf32>
    %cst_6 = arith.constant 2.000000e-01 : f32
    %8 = vector.broadcast %cst_6 : f32 to vector<32x25xf32>
    %9 = arith.mulf %8, %5 : vector<32x25xf32>
    %10 = arith.select %7, %5, %9 : vector<32x25xi1>, vector<32x25xf32>
    %c0_7 = arith.constant 0 : index
    %c0_8 = arith.constant 0 : index
    %11 = vector.load %arg4[%c0_7, %c0_8] : memref<25x15xbf16, #tpu.memory_space<vmem>>, vector<25x15xbf16>
    %cst_9 = arith.constant dense<0.000000e+00> : vector<32x15xf32>
    %12 = tpu.matmul %10, %11, %cst_9 {dimension_numbers = #tpu.dot_dimension_numbers<[1], [0], [0], [1], [0, 0, 1, 1], [], []>} : vector<32x25xf32>, vector<25x15xbf16>, vector<32x15xf32> -> vector<32x15xf32>
    %c0_10 = arith.constant 0 : index
    %c0_11 = arith.constant 0 : index
    %13 = vector.load %arg5[%c0_10, %c0_11] : memref<1x15xf32, #tpu.memory_space<vmem>>, vector<1x15xf32>
    %14 = vector.broadcast %13 : vector<1x15xf32> to vector<32x15xf32>
    %15 = arith.addf %12, %14 : vector<32x15xf32>
    %cst_12 = arith.constant 0.000000e+00 : f32
    %16 = vector.broadcast %cst_12 : f32 to vector<32x15xf32>
    %17 = arith.cmpf ogt, %15, %16 : vector<32x15xf32>
    %cst_13 = arith.constant 2.000000e-01 : f32
    %18 = vector.broadcast %cst_13 : f32 to vector<32x15xf32>
    %19 = arith.mulf %18, %15 : vector<32x15xf32>
    %20 = arith.select %17, %15, %19 : vector<32x15xi1>, vector<32x15xf32>
    %c0_14 = arith.constant 0 : index
    %c0_15 = arith.constant 0 : index
    %21 = vector.load %arg6[%c0_14, %c0_15] : memref<15x15xbf16, #tpu.memory_space<vmem>>, vector<15x15xbf16>
    %cst_16 = arith.constant dense<0.000000e+00> : vector<32x15xf32>
    %22 = tpu.matmul %20, %21, %cst_16 {dimension_numbers = #tpu.dot_dimension_numbers<[1], [0], [0], [1], [0, 0, 1, 1], [], []>} : vector<32x15xf32>, vector<15x15xbf16>, vector<32x15xf32> -> vector<32x15xf32>
    %c0_17 = arith.constant 0 : index
    %c0_18 = arith.constant 0 : index
    %23 = vector.load %arg7[%c0_17, %c0_18] : memref<1x15xf32, #tpu.memory_space<vmem>>, vector<1x15xf32>
    %24 = vector.broadcast %23 : vector<1x15xf32> to vector<32x15xf32>
    %25 = arith.addf %22, %24 : vector<32x15xf32>
    %cst_19 = arith.constant 0.000000e+00 : f32
    %26 = vector.broadcast %cst_19 : f32 to vector<32x15xf32>
    %27 = arith.cmpf ogt, %25, %26 : vector<32x15xf32>
    %cst_20 = arith.constant 2.000000e-01 : f32
    %28 = vector.broadcast %cst_20 : f32 to vector<32x15xf32>
    %29 = arith.mulf %28, %25 : vector<32x15xf32>
    %30 = arith.select %27, %25, %29 : vector<32x15xi1>, vector<32x15xf32>
    %c0_21 = arith.constant 0 : index
    %c0_22 = arith.constant 0 : index
    %31 = vector.load %arg8[%c0_21, %c0_22] : memref<15x15xbf16, #tpu.memory_space<vmem>>, vector<15x15xbf16>
    %cst_23 = arith.constant dense<0.000000e+00> : vector<32x15xf32>
    %32 = tpu.matmul %30, %31, %cst_23 {dimension_numbers = #tpu.dot_dimension_numbers<[1], [0], [0], [1], [0, 0, 1, 1], [], []>} : vector<32x15xf32>, vector<15x15xbf16>, vector<32x15xf32> -> vector<32x15xf32>
    %c0_24 = arith.constant 0 : index
    %c0_25 = arith.constant 0 : index
    %33 = vector.load %arg9[%c0_24, %c0_25] : memref<1x15xf32, #tpu.memory_space<vmem>>, vector<1x15xf32>
    %34 = vector.broadcast %33 : vector<1x15xf32> to vector<32x15xf32>
    %35 = arith.addf %32, %34 : vector<32x15xf32>
    %cst_26 = arith.constant 0.000000e+00 : f32
    %36 = vector.broadcast %cst_26 : f32 to vector<32x15xf32>
    %37 = arith.cmpf ogt, %35, %36 : vector<32x15xf32>
    %cst_27 = arith.constant 2.000000e-01 : f32
    %38 = vector.broadcast %cst_27 : f32 to vector<32x15xf32>
    %39 = arith.mulf %38, %35 : vector<32x15xf32>
    %40 = arith.select %37, %35, %39 : vector<32x15xi1>, vector<32x15xf32>
    %c0_28 = arith.constant 0 : index
    %c0_29 = arith.constant 0 : index
    %41 = vector.load %arg10[%c0_28, %c0_29] : memref<15x10xbf16, #tpu.memory_space<vmem>>, vector<15x10xbf16>
    %cst_30 = arith.constant dense<0.000000e+00> : vector<32x10xf32>
    %42 = tpu.matmul %40, %41, %cst_30 {dimension_numbers = #tpu.dot_dimension_numbers<[1], [0], [0], [1], [0, 0, 1, 1], [], []>} : vector<32x15xf32>, vector<15x10xbf16>, vector<32x10xf32> -> vector<32x10xf32>
    %c0_31 = arith.constant 0 : index
    %c0_32 = arith.constant 0 : index
    %43 = vector.load %arg11[%c0_31, %c0_32] : memref<1x10xf32, #tpu.memory_space<vmem>>, vector<1x10xf32>
    %44 = vector.broadcast %43 : vector<1x10xf32> to vector<32x10xf32>
    %45 = arith.addf %42, %44 : vector<32x10xf32>
    %c0_33 = arith.constant 0 : index
    %c0_34 = arith.constant 0 : index
    %46 = vector.load %arg12[%c0_33, %c0_34] : memref<32x10xf32, #tpu.memory_space<vmem>>, vector<32x10xf32>
    tpu.vector_store %arg12[%c0_33, %c0_34], %45 {strides = array<i32>} : memref<32x10xf32, #tpu.memory_space<vmem>>, vector<32x10xf32>,
    return
  }
  func.func @transform_0(%arg0: i32) -> (i32, i32) {
    %c0_i32 = arith.constant 0 : i32
    %c0_i32_0 = arith.constant 0 : i32
    return %arg0, %c0_i32 : i32, i32
  }
  func.func @transform_1(%arg0: i32) -> (i32, i32) {
    %c0_i32 = arith.constant 0 : i32
    %c0_i32_0 = arith.constant 0 : i32
    %c0_i32_1 = arith.constant 0 : i32
    return %c0_i32, %c0_i32_0 : i32, i32
  }
  func.func @transform_2(%arg0: i32) -> (i32, i32) {
    %c0_i32 = arith.constant 0 : i32
    %c0_i32_0 = arith.constant 0 : i32
    %c0_i32_1 = arith.constant 0 : i32
    return %c0_i32, %c0_i32_0 : i32, i32
  }
  func.func @transform_3(%arg0: i32) -> (i32, i32) {
    %c0_i32 = arith.constant 0 : i32
    %c0_i32_0 = arith.constant 0 : i32
    %c0_i32_1 = arith.constant 0 : i32
    return %c0_i32, %c0_i32_0 : i32, i32
  }
  func.func @transform_4(%arg0: i32) -> (i32, i32) {
    %c0_i32 = arith.constant 0 : i32
    %c0_i32_0 = arith.constant 0 : i32
    %c0_i32_1 = arith.constant 0 : i32
    return %c0_i32, %c0_i32_0 : i32, i32
  }
  func.func @transform_5(%arg0: i32) -> (i32, i32) {
    %c0_i32 = arith.constant 0 : i32
    %c0_i32_0 = arith.constant 0 : i32
    %c0_i32_1 = arith.constant 0 : i32
    return %c0_i32, %c0_i32_0 : i32, i32
  }
  func.func @transform_6(%arg0: i32) -> (i32, i32) {
    %c0_i32 = arith.constant 0 : i32
    %c0_i32_0 = arith.constant 0 : i32
    %c0_i32_1 = arith.constant 0 : i32
    return %c0_i32, %c0_i32_0 : i32, i32
  }
  func.func @transform_7(%arg0: i32) -> (i32, i32) {
    %c0_i32 = arith.constant 0 : i32
    %c0_i32_0 = arith.constant 0 : i32
    %c0_i32_1 = arith.constant 0 : i32
    return %c0_i32, %c0_i32_0 : i32, i32
  }
  func.func @transform_8(%arg0: i32) -> (i32, i32) {
    %c0_i32 = arith.constant 0 : i32
    %c0_i32_0 = arith.constant 0 : i32
    %c0_i32_1 = arith.constant 0 : i32
    return %c0_i32, %c0_i32_0 : i32, i32
  }
  func.func @transform_9(%arg0: i32) -> (i32, i32) {
    %c0_i32 = arith.constant 0 : i32
    %c0_i32_0 = arith.constant 0 : i32
    %c0_i32_1 = arith.constant 0 : i32
    return %c0_i32, %c0_i32_0 : i32, i32
  }
  func.func @transform_10(%arg0: i32) -> (i32, i32) {
    %c0_i32 = arith.constant 0 : i32
    %c0_i32_0 = arith.constant 0 : i32
    %c0_i32_1 = arith.constant 0 : i32
    return %c0_i32, %c0_i32_0 : i32, i32
  }
  func.func @transform_11(%arg0: i32) -> (i32, i32) {
    %c0_i32 = arith.constant 0 : i32
    %c0_i32_0 = arith.constant 0 : i32
    return %arg0, %c0_i32 : i32, i32
  }
}

</mosaic_0001>

<bundles_post_ra>
// kernel: tpu_custom_call.1
= control target key start
LH: loop header
LB: loop body
LE: loop exit
PB: predicated region body
PF: predicated region fallthrough
CT: control target
= control target key end

     0   :  { %vm68_vm0 = vcmask 1043456   ;;  %vm61_vm1 = vcmask 64512   ;;  %vm168_vm2 = vcmask 1044480   ;;  %v626_v5 = vmov 65535   ;;  %s759_s1 = inlined_call_operand.vmem [shape: bf16[8,25], index: 1, kind: input, shape index: {}]   ;;  %s760_s0 = inlined_call_operand.vmem [shape: bf16[32,8], index: 0, kind: input, shape index: {}]   ;;  %s761_s3 = inlined_call_operand.vmem [shape: bf16[25,15], index: 3, kind: input, shape index: {}]   ;;  %s762_s2 = inlined_call_operand.vmem [shape: f32[1,25], index: 2, kind: input, shape index: {}]   ;;  %s763_s5 = inlined_call_operand.vmem [shape: bf16[15,15], index: 5, kind: input, shape index: {}]   ;;  %s764_s4 = inlined_call_operand.vmem [shape: f32[1,15], index: 4, kind: input, shape index: {}]   ;;  %s765_s7 = inlined_call_operand.vmem [shape: bf16[15,15], index: 7, kind: input, shape index: {}]   ;;  %s766_s6 = inlined_call_operand.vmem [shape: f32[1,15], index: 6, kind: input, shape index: {}]   ;;  %s767_s9 = inlined_call_operand.vmem [shape: bf16[15,10], index: 9, kind: input, shape index: {}]   ;;  %s768_s8 = inlined_call_operand.vmem [shape: f32[1,15], index: 8, kind: input, shape index: {}]   ;;  %s769_s10 = inlined_call_operand.vmem [shape: f32[1,10], index: 10, kind: input, shape index: {}]   ;;  %s770_s11 = inlined_call_operand.vmem [shape: f32[32,10], index: 11, kind: output, shape index: {}]  }
   0x1   :  { %v43_v0 = vld [vmem:[%s759_s1] sm:$0xf]  ;;  %v620_v3 = vld [vmem:[%s760_s0 + $0x8] sm:$0xff]   ;;  %v169_v6 = vsel %vm68_vm0, 4294967295, %v626_v5  ;;  %vm155_vm4 = vcmask 203776   ;;  %vm266_vm8 = vcmask 1046528  }
   0x2   :  { %617 = vmatprep.subr.msk.bf16.mxu0 %vm68_vm0, %v43_v0  ;;  %v70_v1 = vsel %vm68_vm0, %v43_v0, 0  ;;  %v619_v2 = vld [vmem:[%s760_s0] sm:$0xff]   ;;  %v621_v4 = vld [vmem:[%s761_s3 + $0x8] sm:$0x1f]   ;;  %v170_v7 = vsel %vm168_vm2, %v169_v6, 0  ;;  %v268_v27 = vsel %vm266_vm8, 4294967295, %v626_v5 }
   0x3   :  { %578 = vmatpush3.bf16.msra.mxu0 %v70_v1  ;;  %579 = vmatprep.mubr.msk.bf16.mxu0 %vm61_vm1, %v619_v2  ;;  %v172_v8 = vand.u32 %v621_v4, %v170_v7  ;;  %v622_v9 = vld [vmem:[%s761_s3] sm:$0xff]   ;;  %vm267_vm9 = vcmask 1047552   ;;  %vm253_vm10 = vcmask 121856  }
   0x4   :  { %v523_v11 = vld [vmem:[%s762_s2] ss:$0 sm:$0xff]  ;;  %v712_v29 = vsel %vm267_vm9, %v268_v27, 0 }
   0x5   :  { %583 = vmatprep.subr.bf16.mxu1 %v172_v8  ;;  %v623_v28 = vld [vmem:[%s763_s5] sm:$0xff]  }
   0x6   :  { %580 = vmatmul.mubr.msk.bf16.vlgmr.msra.gmra.mxu0 %vm61_vm1, %v620_v3  ;;  %584 = vmatpush3.bf16.msra.mxu1 %v172_v8  ;;  %v271_v30 = vand.u32 %v623_v28, %v712_v29  ;;  %v528_v31 = vld [vmem:[%s764_s4] ss:$0 sm:$0xff] }
   0x7   :  { %585 = vmatprep.subr.bf16.mxu1 %v622_v9  ;;  %v624_v48 = vld [vmem:[%s765_s7] sm:$0xff]  }
   0x8   :  { %593 = vmatprep.subr.bf16.mxu0 %v271_v30  ;;  %v365_v49 = vand.u32 %v624_v48, %v712_v29  ;;  %v535_v50 = vld [vmem:[%s766_s6] ss:$0 sm:$0xff] }
   0x9   :  { %594 = vmatpush3.bf16.msra.mxu0 %v271_v30  ;;  %v625_v3 = vld [vmem:[%s767_s9] sm:$0xff]  }
   0xa   :  { %586 = vmatpush3.bf16.msra.mxu1 %v622_v9  ;;  %v459_v4 = vand.u32 %v625_v3, %v712_v29  ;;  %v541_v5 = vld [vmem:[%s768_s8] ss:$0 sm:$0xff] }
   0xb   :  { %601 = vmatprep.subr.bf16.mxu1 %v365_v49 }
   0xc   :  { %609 = vmatprep.subr.bf16.mxu0 %v459_v4 }
  0xc6   :  { %v581_v10 = vpop.f32.mrf.mxu0 }
  0xc7   :  { %v115_v14 = vadd.f32 %v581_v10, %v523_v11 }
  0xc8   :  { %v106_v12 = vpop.f32.mrf.mxu0 }
  0xc9   :  { %v107_v13 = vadd.f32 %v523_v11, %v106_v12  ;;  %v127_v21 = vmul.f32 0.2, %v115_v14  ;;  %vm123_vm5 = vcmp.gt.f32.partialorder %v115_v14, 0.0 }
  0xca   :  { %v582_v15 = vpop.f32.mrf.mxu0 }
  0xcb   :  { %vm121_vm3 = vcmp.gt.f32.partialorder %v107_v13, 0.0  ;;  %v125_v16 = vmul.f32 0.2, %v107_v13  ;;  %v118_v18 = vadd.f32 %v582_v15, %v523_v11  ;;  %v131_v25 = vsel %vm123_vm5, %v115_v14, %v127_v21 }
  0xcc   :  { %v109_v17 = vpop.f32.mrf.mxu0 }
  0xcd   :  { %v110_v19 = vadd.f32 %v523_v11, %v109_v17  ;;  %v129_v20 = vsel %vm121_vm3, %v107_v13, %v125_v16  ;;  %v128_v23 = vmul.f32 0.2, %v118_v18  ;;  %vm124_vm7 = vcmp.gt.f32.partialorder %v118_v18, 0.0 }
  0xce   :  { %587 = vmatprep.mubr.msk.f32.mxu1 %vm155_vm4, %v129_v20 }
  0xcf   :  { %vm122_vm6 = vcmp.gt.f32.partialorder %v110_v19, 0.0  ;;  %v126_v22 = vmul.f32 0.2, %v110_v19  ;;  %v132_v26 = vsel %vm124_vm7, %v118_v18, %v128_v23  ;;  %vm514_vm7 = vcmask 80896  }
  0xd1   :  { %v130_v24 = vsel %vm122_vm6, %v110_v19, %v126_v22  ;;  %v547_v22 = vld [vmem:[%s769_s10] ss:$0 sm:$0xff] }
  0xd2   :  { %588 = vmatmul.mubr.msk.f32.vlgmr.msra.gmra.mxu1 %vm155_vm4, %v130_v24 }
  0xd3   :  { %590 = vmatprep.mubr.msk.f32.mxu1 %vm155_vm4, %v131_v25  ;;  %602 = vmatpush3.bf16.msra.mxu1 %v365_v49 }
  0xd6   :  { %591 = vmatmul.mubr.msk.f32.gmra.mxu1 %vm155_vm4, %v132_v26 }
 0x192   :  { %v589_v32 = vpop.f32.mrf.mxu1 }
 0x193   :  { %v214_v33 = vadd.f32 %v589_v32, %v528_v31 }
 0x194   :  { %v208_v34 = vpop.f32.mrf.mxu1 }
 0x195   :  { %v209_v35 = vadd.f32 %v528_v31, %v208_v34  ;;  %v232_v36 = vmul.f32 0.2, %v214_v33  ;;  %vm228_vm11 = vcmp.gt.f32.partialorder %v214_v33, 0.0 }
 0x196   :  { %v592_v37 = vpop.f32.mrf.mxu1 }
 0x197   :  { %vm227_vm12 = vcmp.gt.f32.partialorder %v209_v35, 0.0  ;;  %v231_v38 = vmul.f32 0.2, %v209_v35  ;;  %v224_v39 = vadd.f32 %v592_v37, %v528_v31  ;;  %v236_v43 = vsel %vm228_vm11, %v214_v33, %v232_v36 }
 0x198   :  { %v218_v40 = vpop.f32.mrf.mxu1 }
 0x199   :  { %v219_v41 = vadd.f32 %v528_v31, %v218_v40  ;;  %v235_v42 = vsel %vm227_vm12, %v209_v35, %v231_v38  ;;  %v234_v44 = vmul.f32 0.2, %v224_v39  ;;  %vm230_vm13 = vcmp.gt.f32.partialorder %v224_v39, 0.0 }
 0x19a   :  { %595 = vmatprep.mubr.msk.f32.mxu0 %vm253_vm10, %v235_v42 }
 0x19b   :  { %vm229_vm14 = vcmp.gt.f32.partialorder %v219_v41, 0.0  ;;  %v233_v45 = vmul.f32 0.2, %v219_v41  ;;  %596 = vmatmul.mubr.msk.f32.vlgmr.msra.gmra.mxu0 %vm253_vm10, %v236_v43  ;;  %v238_v47 = vsel %vm230_vm13, %v224_v39, %v234_v44 }
 0x19c   :  { %610 = vmatpush3.bf16.msra.mxu0 %v459_v4 }
 0x19d   :  { %v237_v46 = vsel %vm229_vm14, %v219_v41, %v233_v45 }
 0x19e   :  { %598 = vmatprep.mubr.msk.f32.mxu0 %vm253_vm10, %v237_v46 }
 0x19f   :  { %599 = vmatmul.mubr.msk.f32.gmra.mxu0 %vm253_vm10, %v238_v47 }
 0x25b   :  { %v597_v51 = vpop.f32.mrf.mxu0 }
 0x25c   :  { %v313_v52 = vadd.f32 %v597_v51, %v535_v50 }
 0x25d   :  { %v307_v53 = vpop.f32.mrf.mxu0 }
 0x25e   :  { %v308_v54 = vadd.f32 %v535_v50, %v307_v53  ;;  %v331_v55 = vmul.f32 0.2, %v313_v52  ;;  %vm327_vm15 = vcmp.gt.f32.partialorder %v313_v52, 0.0 }
 0x25f   :  { %v600_v56 = vpop.f32.mrf.mxu0 }
 0x260   :  { %vm326_vm0 = vcmp.gt.f32.partialorder %v308_v54, 0.0  ;;  %v330_v57 = vmul.f32 0.2, %v308_v54  ;;  %v323_v58 = vadd.f32 %v600_v56, %v535_v50  ;;  %v335_v62 = vsel %vm327_vm15, %v313_v52, %v331_v55 }
 0x261   :  { %v317_v59 = vpop.f32.mrf.mxu0 }
 0x262   :  { %v318_v60 = vadd.f32 %v535_v50, %v317_v59  ;;  %v334_v61 = vsel %vm326_vm0, %v308_v54, %v330_v57  ;;  %v333_v63 = vmul.f32 0.2, %v323_v58  ;;  %vm329_vm1 = vcmp.gt.f32.partialorder %v323_v58, 0.0 }
 0x263   :  { %603 = vmatprep.mubr.msk.f32.mxu1 %vm253_vm10, %v334_v61 }
 0x264   :  { %vm328_vm2 = vcmp.gt.f32.partialorder %v318_v60, 0.0  ;;  %v332_v0 = vmul.f32 0.2, %v318_v60  ;;  %604 = vmatmul.mubr.msk.f32.vlgmr.msra.gmra.mxu1 %vm253_vm10, %v335_v62  ;;  %v337_v2 = vsel %vm329_vm1, %v323_v58, %v333_v63 }
 0x266   :  { %v336_v1 = vsel %vm328_vm2, %v318_v60, %v332_v0 }
 0x267   :  { %606 = vmatprep.mubr.msk.f32.mxu1 %vm253_vm10, %v336_v1 }
 0x268   :  { %607 = vmatmul.mubr.msk.f32.gmra.mxu1 %vm253_vm10, %v337_v2 }
 0x324   :  { %v605_v6 = vpop.f32.mrf.mxu1 }
 0x325   :  { %v407_v7 = vadd.f32 %v605_v6, %v541_v5 }
 0x326   :  { %v401_v8 = vpop.f32.mrf.mxu1 }
 0x327   :  { %v402_v9 = vadd.f32 %v541_v5, %v401_v8  ;;  %v425_v10 = vmul.f32 0.2, %v407_v7  ;;  %vm421_vm3 = vcmp.gt.f32.partialorder %v407_v7, 0.0 }
 0x328   :  { %v608_v11 = vpop.f32.mrf.mxu1 }
 0x329   :  { %vm420_vm4 = vcmp.gt.f32.partialorder %v402_v9, 0.0  ;;  %v424_v12 = vmul.f32 0.2, %v402_v9  ;;  %v417_v13 = vadd.f32 %v608_v11, %v541_v5  ;;  %v429_v17 = vsel %vm421_vm3, %v407_v7, %v425_v10 }
 0x32a   :  { %v411_v14 = vpop.f32.mrf.mxu1 }
 0x32b   :  { %v412_v15 = vadd.f32 %v541_v5, %v411_v14  ;;  %v428_v16 = vsel %vm420_vm4, %v402_v9, %v424_v12  ;;  %v427_v18 = vmul.f32 0.2, %v417_v13  ;;  %vm423_vm5 = vcmp.gt.f32.partialorder %v417_v13, 0.0 }
 0x32c   :  { %611 = vmatprep.mubr.msk.f32.mxu0 %vm253_vm10, %v428_v16 }
 0x32d   :  { %vm422_vm6 = vcmp.gt.f32.partialorder %v412_v15, 0.0  ;;  %v426_v19 = vmul.f32 0.2, %v412_v15  ;;  %612 = vmatmul.mubr.msk.f32.vlgmr.msra.gmra.mxu0 %vm253_vm10, %v429_v17  ;;  %v431_v21 = vsel %vm423_vm5, %v417_v13, %v427_v18 }
 0x32f   :  { %v430_v20 = vsel %vm422_vm6, %v412_v15, %v426_v19 }
 0x330   :  { %614 = vmatprep.mubr.msk.f32.mxu0 %vm253_vm10, %v430_v20 }
 0x331   :  { %615 = vmatmul.mubr.msk.f32.gmra.mxu0 %vm253_vm10, %v431_v21 }
 0x3ed   :  { %v613_v23 = vpop.f32.mrf.mxu0 }
 0x3ee   :  { %v501_v24 = vadd.f32 %v613_v23, %v547_v22 }
 0x3ef   :  { %v495_v25 = vpop.f32.mrf.mxu0 }
 0x3f0   :  { %516 = vst.msk [vmem:[%s770_s11 + $0x8] sm:$0xff] %vm514_vm7, %v501_v24  ;;  %v496_v26 = vadd.f32 %v547_v22, %v495_v25 }
 0x3f1   :  { %v616_v27 = vpop.f32.mrf.mxu0 }
 0x3f2   :  { %515 = vst.msk [vmem:[%s770_s11] sm:$0xff] %vm514_vm7, %v496_v26  ;;  %v511_v28 = vadd.f32 %v616_v27, %v547_v22 }
 0x3f3   :  { %v505_v29 = vpop.f32.mrf.mxu0 }
 0x3f4   :  { %518 = vst.msk [vmem:[%s770_s11 + $0x18] sm:$0xff] %vm514_vm7, %v511_v28  ;;  %v506_v30 = vadd.f32 %v547_v22, %v505_v29 }
 0x3f6   :  { %517 = vst.msk [vmem:[%s770_s11 + $0x10] sm:$0xff] %vm514_vm7, %v506_v30 }

</bundles_post_ra>
